<compile_context>
chip_gen: v5e
topology: v5e:2x2
jax: 0.10.0
libtpu: 0.0.40
codegen_flags: <defaults>
</compile_context>

<pallas_src>
import jax
import jax.numpy as jnp
from jax.experimental import pallas as pl
from jax.experimental.pallas import tpu as pltpu

LEAKY_SLOPE = 0.01           # PyTorch nn.LeakyReLU default negative_slope
ENC_DIM = 2
DEC_DIM = 11
OUT_ROWS = ENC_DIM + DEC_DIM  # 13 : rows [0:2]=encoded, rows [2:13]=decoded


def _leaky_relu(x):
    return jnp.where(x >= 0, x, LEAKY_SLOPE * x)


def ae_kernel(x_ref,
              w1_ref, b1_ref, w2_ref, b2_ref,   # encoder params
              w3_ref, b3_ref, w4_ref, b4_ref,   # decoder params
              out_ref):
    """Batch on the lane axis.  x_ref:(11,T)  w_i:(out,in)  b_i:(out,1)  out_ref:(13,T)."""
    x = x_ref[...]                                                        # (11, T)

    # ---- encoder ----
    h = jnp.tanh(jnp.dot(w1_ref[...], x, preferred_element_type=jnp.float32)
                 + b1_ref[...])                                           # (6, T)
    e = _leaky_relu(jnp.dot(w2_ref[...], h, preferred_element_type=jnp.float32)
                    + b2_ref[...])                                        # (2, T)

    # ---- decoder ----
    g = jnp.tanh(jnp.dot(w3_ref[...], e, preferred_element_type=jnp.float32)
                 + b3_ref[...])                                           # (6, T)
    d = _leaky_relu(jnp.dot(w4_ref[...], g, preferred_element_type=jnp.float32)
                    + b4_ref[...])                                        # (11, T)

    # single lane-dense output slab
    out_ref[0:ENC_DIM, :] = e.astype(out_ref.dtype)
    out_ref[ENC_DIM:OUT_ROWS, :] = d.astype(out_ref.dtype)


def _round_up(a, m):
    return ((a + m - 1) // m) * m


def autoencoder_forward(x, params, *, batch_tile=512):
    """x: (N, 11) float32.  params: PyTorch-layout weights (out,in) and biases (out,).

    Returns (encoded, decoded) with shapes (N, 2) and (N, 11), matching the module.
    """
    n, feat = x.shape
    assert feat == 11

    w1, b1 = params["w1"], params["b1"]
    w2, b2 = params["w2"], params["b2"]
    w3, b3 = params["w3"], params["b3"]
    w4, b4 = params["w4"], params["b4"]

    # --- layout plumbing: batch on lanes, padded to a multiple of the tile ---
    tile = min(batch_tile, _round_up(n, 128))          # lane tile, multiple of 128
    n_pad = _round_up(n, tile)
    xt = jnp.zeros((11, n_pad), x.dtype).at[:, :n].set(x.T)

    # (out, 1) column biases broadcast across lanes inside the kernel
    b1c = b1.reshape(-1, 1)
    b2c = b2.reshape(-1, 1)
    b3c = b3.reshape(-1, 1)
    b4c = b4.reshape(-1, 1)

    grid = (n_pad // tile,)
    const = lambda i: (0, 0)   # params stay VMEM-resident across grid steps

    # Advisory cost estimate for XLA's scheduler (kernel is memory-bound).
    n_flops = 2 * (11 * 6 + 6 * 2 + 2 * 6 + 6 * 11) * n_pad
    n_bytes = 4 * (11 + OUT_ROWS) * n_pad + 4 * (2 * (11 * 6 + 6 * 2) + 2 * (6 + 2) + 11)
    cost = pl.CostEstimate(flops=n_flops, transcendentals=12 * n_pad,
                           bytes_accessed=n_bytes)

    out = pl.pallas_call(
        ae_kernel,
        out_shape=jax.ShapeDtypeStruct((OUT_ROWS, n_pad), jnp.float32),
        grid_spec=pltpu.PrefetchScalarGridSpec(
            num_scalar_prefetch=0,
            grid=grid,
            in_specs=[
                pl.BlockSpec((11, tile), lambda i: (0, i)),
                pl.BlockSpec(w1.shape, const), pl.BlockSpec(b1c.shape, const),
                pl.BlockSpec(w2.shape, const), pl.BlockSpec(b2c.shape, const),
                pl.BlockSpec(w3.shape, const), pl.BlockSpec(b3c.shape, const),
                pl.BlockSpec(w4.shape, const), pl.BlockSpec(b4c.shape, const),
            ],
            out_specs=pl.BlockSpec((OUT_ROWS, tile), lambda i: (0, i)),
        ),
        compiler_params=pltpu.CompilerParams(
            dimension_semantics=("parallel",)),
        cost_estimate=cost,
    )(xt, w1, b1c, w2, b2c, w3, b3c, w4, b4c)

    enc = out[:ENC_DIM, :n].T            # (N, 2)
    dec = out[ENC_DIM:, :n].T            # (N, 11)
    return enc, dec


def init_params(key):
    """PyTorch nn.Linear default init: U(-1/sqrt(fan_in), +1/sqrt(fan_in)).
    Weights kept in native (out, in) layout; biases as (out,)."""
    def linear(k, fan_in, fan_out):
        kw, kb = jax.random.split(k)
        bound = 1.0 / jnp.sqrt(fan_in)
        w = jax.random.uniform(kw, (fan_out, fan_in), jnp.float32, -bound, bound)
        b = jax.random.uniform(kb, (fan_out,), jnp.float32, -bound, bound)
        return w, b

    k1, k2, k3, k4 = jax.random.split(key, 4)
    w1, b1 = linear(k1, 11, 6)
    w2, b2 = linear(k2, 6, 2)
    w3, b3 = linear(k3, 2, 6)
    w4, b4 = linear(k4, 6, 11)
    return dict(w1=w1, b1=b1, w2=w2, b2=b2, w3=w3, b3=b3, w4=w4, b4=b4)


def reference_forward(x, p):
    h = jnp.tanh(x @ p["w1"].T + p["b1"])
    e = jax.nn.leaky_relu(h @ p["w2"].T + p["b2"], LEAKY_SLOPE)
    g = jnp.tanh(e @ p["w3"].T + p["b3"])
    d = jax.nn.leaky_relu(g @ p["w4"].T + p["b4"], LEAKY_SLOPE)
    return e, d


if __name__ == "__main__":
    key = jax.random.PRNGKey(0)
    kx, kp, kx2 = jax.random.split(key, 3)
    params = init_params(kp)

    # small shape consistent with the module
    batch = 8
    x = jax.random.normal(kx, (batch, 11), jnp.float32)
    enc, dec = jax.block_until_ready(autoencoder_forward(x, params))
    enc_ref, dec_ref = reference_forward(x, params)
    assert enc.shape == (batch, 2) and dec.shape == (batch, 11)
    assert jnp.allclose(enc, enc_ref, atol=1e-5, rtol=1e-5)
    assert jnp.allclose(dec, dec_ref, atol=1e-5, rtol=1e-5)

    # exercise multiple grid steps (tile smaller than padded batch)
    batch2 = 640
    x2 = jax.random.normal(kx2, (batch2, 11), jnp.float32)
    enc2, dec2 = jax.block_until_ready(
        autoencoder_forward(x2, params, batch_tile=256))
    enc2_ref, dec2_ref = reference_forward(x2, params)
    assert jnp.allclose(enc2, enc2_ref, atol=1e-5, rtol=1e-5)
    assert jnp.allclose(dec2, dec2_ref, atol=1e-5, rtol=1e-5)

    print("KERNEL_OK")
</pallas_src>

<mosaic_0001>
module attributes {stable_mosaic.version = 11 : i64} {
  func.func @ae_kernel(%arg0: i32, %arg1: memref<11x128xf32, #tpu.memory_space<vmem>>, %arg2: memref<6x11xf32, #tpu.memory_space<vmem>>, %arg3: memref<6x1xf32, #tpu.memory_space<vmem>>, %arg4: memref<2x6xf32, #tpu.memory_space<vmem>>, %arg5: memref<2x1xf32, #tpu.memory_space<vmem>>, %arg6: memref<6x2xf32, #tpu.memory_space<vmem>>, %arg7: memref<6x1xf32, #tpu.memory_space<vmem>>, %arg8: memref<11x6xf32, #tpu.memory_space<vmem>>, %arg9: memref<11x1xf32, #tpu.memory_space<vmem>>, %arg10: memref<13x128xf32, #tpu.memory_space<vmem>>) attributes {dimension_semantics = [#tpu.dimension_semantics<parallel>], iteration_bounds = array<i64: 1>, scalar_prefetch = 0 : i64, scratch_operands = 0 : i64, tpu.core_type = #tpu.core_type<tc>, window_params = [{transform_indices = @transform_0, window_bounds = array<i64: 11, 128>}, {pipeline_mode = #tpu.pipeline_mode<synchronous>, transform_indices = @transform_1, window_bounds = array<i64: 6, 11>}, {pipeline_mode = #tpu.pipeline_mode<synchronous>, transform_indices = @transform_2, window_bounds = array<i64: 6, 1>}, {pipeline_mode = #tpu.pipeline_mode<synchronous>, transform_indices = @transform_3, window_bounds = array<i64: 2, 6>}, {pipeline_mode = #tpu.pipeline_mode<synchronous>, transform_indices = @transform_4, window_bounds = array<i64: 2, 1>}, {pipeline_mode = #tpu.pipeline_mode<synchronous>, transform_indices = @transform_5, window_bounds = array<i64: 6, 2>}, {pipeline_mode = #tpu.pipeline_mode<synchronous>, transform_indices = @transform_6, window_bounds = array<i64: 6, 1>}, {pipeline_mode = #tpu.pipeline_mode<synchronous>, transform_indices = @transform_7, window_bounds = array<i64: 11, 6>}, {pipeline_mode = #tpu.pipeline_mode<synchronous>, transform_indices = @transform_8, window_bounds = array<i64: 11, 1>}, {transform_indices = @transform_9, window_bounds = array<i64: 13, 128>}]} {
    %c0 = arith.constant 0 : index
    %c0_0 = arith.constant 0 : index
    %0 = vector.load %arg1[%c0, %c0_0] : memref<11x128xf32, #tpu.memory_space<vmem>>, vector<11x128xf32>
    %c0_1 = arith.constant 0 : index
    %c0_2 = arith.constant 0 : index
    %1 = vector.load %arg2[%c0_1, %c0_2] : memref<6x11xf32, #tpu.memory_space<vmem>>, vector<6x11xf32>
    %cst = arith.constant dense<0.000000e+00> : vector<6x128xf32>
    %2 = tpu.matmul %1, %0, %cst {dimension_numbers = #tpu.dot_dimension_numbers<[1], [0], [0], [1], [0, 0, 1, 1], [], []>} : vector<6x11xf32>, vector<11x128xf32>, vector<6x128xf32> -> vector<6x128xf32>
    %c0_3 = arith.constant 0 : index
    %c0_4 = arith.constant 0 : index
    %3 = vector.load %arg3[%c0_3, %c0_4] : memref<6x1xf32, #tpu.memory_space<vmem>>, vector<6x1xf32>
    %4 = vector.broadcast %3 : vector<6x1xf32> to vector<6x128xf32>
    %5 = arith.addf %2, %4 : vector<6x128xf32>
    %6 = math.tanh %5 : vector<6x128xf32>
    %c0_5 = arith.constant 0 : index
    %c0_6 = arith.constant 0 : index
    %7 = vector.load %arg4[%c0_5, %c0_6] : memref<2x6xf32, #tpu.memory_space<vmem>>, vector<2x6xf32>
    %cst_7 = arith.constant dense<0.000000e+00> : vector<2x128xf32>
    %8 = tpu.matmul %7, %6, %cst_7 {dimension_numbers = #tpu.dot_dimension_numbers<[1], [0], [0], [1], [0, 0, 1, 1], [], []>} : vector<2x6xf32>, vector<6x128xf32>, vector<2x128xf32> -> vector<2x128xf32>
    %c0_8 = arith.constant 0 : index
    %c0_9 = arith.constant 0 : index
    %9 = vector.load %arg5[%c0_8, %c0_9] : memref<2x1xf32, #tpu.memory_space<vmem>>, vector<2x1xf32>
    %10 = vector.broadcast %9 : vector<2x1xf32> to vector<2x128xf32>
    %11 = arith.addf %8, %10 : vector<2x128xf32>
    %cst_10 = arith.constant 0.000000e+00 : f32
    %12 = vector.broadcast %cst_10 : f32 to vector<2x128xf32>
    %13 = arith.cmpf oge, %11, %12 : vector<2x128xf32>
    %cst_11 = arith.constant 0.00999999977 : f32
    %14 = vector.broadcast %cst_11 : f32 to vector<2x128xf32>
    %15 = arith.mulf %14, %11 : vector<2x128xf32>
    %16 = arith.select %13, %11, %15 : vector<2x128xi1>, vector<2x128xf32>
    %c0_12 = arith.constant 0 : index
    %c0_13 = arith.constant 0 : index
    %17 = vector.load %arg6[%c0_12, %c0_13] : memref<6x2xf32, #tpu.memory_space<vmem>>, vector<6x2xf32>
    %cst_14 = arith.constant dense<0.000000e+00> : vector<6x128xf32>
    %18 = tpu.matmul %17, %16, %cst_14 {dimension_numbers = #tpu.dot_dimension_numbers<[1], [0], [0], [1], [0, 0, 1, 1], [], []>} : vector<6x2xf32>, vector<2x128xf32>, vector<6x128xf32> -> vector<6x128xf32>
    %c0_15 = arith.constant 0 : index
    %c0_16 = arith.constant 0 : index
    %19 = vector.load %arg7[%c0_15, %c0_16] : memref<6x1xf32, #tpu.memory_space<vmem>>, vector<6x1xf32>
    %20 = vector.broadcast %19 : vector<6x1xf32> to vector<6x128xf32>
    %21 = arith.addf %18, %20 : vector<6x128xf32>
    %22 = math.tanh %21 : vector<6x128xf32>
    %c0_17 = arith.constant 0 : index
    %c0_18 = arith.constant 0 : index
    %23 = vector.load %arg8[%c0_17, %c0_18] : memref<11x6xf32, #tpu.memory_space<vmem>>, vector<11x6xf32>
    %cst_19 = arith.constant dense<0.000000e+00> : vector<11x128xf32>
    %24 = tpu.matmul %23, %22, %cst_19 {dimension_numbers = #tpu.dot_dimension_numbers<[1], [0], [0], [1], [0, 0, 1, 1], [], []>} : vector<11x6xf32>, vector<6x128xf32>, vector<11x128xf32> -> vector<11x128xf32>
    %c0_20 = arith.constant 0 : index
    %c0_21 = arith.constant 0 : index
    %25 = vector.load %arg9[%c0_20, %c0_21] : memref<11x1xf32, #tpu.memory_space<vmem>>, vector<11x1xf32>
    %26 = vector.broadcast %25 : vector<11x1xf32> to vector<11x128xf32>
    %27 = arith.addf %24, %26 : vector<11x128xf32>
    %cst_22 = arith.constant 0.000000e+00 : f32
    %28 = vector.broadcast %cst_22 : f32 to vector<11x128xf32>
    %29 = arith.cmpf oge, %27, %28 : vector<11x128xf32>
    %cst_23 = arith.constant 0.00999999977 : f32
    %30 = vector.broadcast %cst_23 : f32 to vector<11x128xf32>
    %31 = arith.mulf %30, %27 : vector<11x128xf32>
    %32 = arith.select %29, %27, %31 : vector<11x128xi1>, vector<11x128xf32>
    %c0_24 = arith.constant 0 : index
    %c0_25 = arith.constant 0 : index
    %33 = vector.load %arg10[%c0_24, %c0_25] : memref<13x128xf32, #tpu.memory_space<vmem>>, vector<2x128xf32>
    tpu.vector_store %arg10[%c0_24, %c0_25], %16 {strides = array<i32>} : memref<13x128xf32, #tpu.memory_space<vmem>>, vector<2x128xf32>,
    %c2 = arith.constant 2 : index
    %c0_26 = arith.constant 0 : index
    %34 = vector.load %arg10[%c2, %c0_26] : memref<13x128xf32, #tpu.memory_space<vmem>>, vector<11x128xf32>
    tpu.vector_store %arg10[%c2, %c0_26], %32 {strides = array<i32>} : memref<13x128xf32, #tpu.memory_space<vmem>>, vector<11x128xf32>,
    return
  }
  func.func @transform_0(%arg0: i32) -> (i32, i32) {
    %c0_i32 = arith.constant 0 : i32
    %c0_i32_0 = arith.constant 0 : i32
    return %c0_i32, %arg0 : i32, i32
  }
  func.func @transform_1(%arg0: i32) -> (i32, i32) {
    %c0_i32 = arith.constant 0 : i32
    %c0_i32_0 = arith.constant 0 : i32
    %c0_i32_1 = arith.constant 0 : i32
    return %c0_i32, %c0_i32_0 : i32, i32
  }
  func.func @transform_2(%arg0: i32) -> (i32, i32) {
    %c0_i32 = arith.constant 0 : i32
    %c0_i32_0 = arith.constant 0 : i32
    %c0_i32_1 = arith.constant 0 : i32
    return %c0_i32, %c0_i32_0 : i32, i32
  }
  func.func @transform_3(%arg0: i32) -> (i32, i32) {
    %c0_i32 = arith.constant 0 : i32
    %c0_i32_0 = arith.constant 0 : i32
    %c0_i32_1 = arith.constant 0 : i32
    return %c0_i32, %c0_i32_0 : i32, i32
  }
  func.func @transform_4(%arg0: i32) -> (i32, i32) {
    %c0_i32 = arith.constant 0 : i32
    %c0_i32_0 = arith.constant 0 : i32
    %c0_i32_1 = arith.constant 0 : i32
    return %c0_i32, %c0_i32_0 : i32, i32
  }
  func.func @transform_5(%arg0: i32) -> (i32, i32) {
    %c0_i32 = arith.constant 0 : i32
    %c0_i32_0 = arith.constant 0 : i32
    %c0_i32_1 = arith.constant 0 : i32
    return %c0_i32, %c0_i32_0 : i32, i32
  }
  func.func @transform_6(%arg0: i32) -> (i32, i32) {
    %c0_i32 = arith.constant 0 : i32
    %c0_i32_0 = arith.constant 0 : i32
    %c0_i32_1 = arith.constant 0 : i32
    return %c0_i32, %c0_i32_0 : i32, i32
  }
  func.func @transform_7(%arg0: i32) -> (i32, i32) {
    %c0_i32 = arith.constant 0 : i32
    %c0_i32_0 = arith.constant 0 : i32
    %c0_i32_1 = arith.constant 0 : i32
    return %c0_i32, %c0_i32_0 : i32, i32
  }
  func.func @transform_8(%arg0: i32) -> (i32, i32) {
    %c0_i32 = arith.constant 0 : i32
    %c0_i32_0 = arith.constant 0 : i32
    %c0_i32_1 = arith.constant 0 : i32
    return %c0_i32, %c0_i32_0 : i32, i32
  }
  func.func @transform_9(%arg0: i32) -> (i32, i32) {
    %c0_i32 = arith.constant 0 : i32
    %c0_i32_0 = arith.constant 0 : i32
    return %c0_i32, %arg0 : i32, i32
  }
}

</mosaic_0001>

<bundles_post_ra>
// kernel: tpu_custom_call.1
= control target key start
LH: loop header
LB: loop body
LE: loop exit
PB: predicated region body
PF: predicated region fallthrough
CT: control target
= control target key end

     0   :  { %vm46_vm0 = vcmask 1042432   ;;  %vm42_vm1 = vcmask 89088   ;;  %v264_v4 = vmov 0   ;;  %s362_s0 = inlined_call_operand.vmem [shape: f32[11,128], index: 0, kind: input, shape index: {}]   ;;  %s363_s1 = inlined_call_operand.vmem [shape: f32[6,11], index: 1, kind: input, shape index: {}]   ;;  %s364_s2 = inlined_call_operand.vmem [shape: f32[6,1], index: 2, kind: input, shape index: {}]   ;;  %s365_s3 = inlined_call_operand.vmem [shape: f32[2,6], index: 3, kind: input, shape index: {}]   ;;  %s366_s4 = inlined_call_operand.vmem [shape: f32[2,1], index: 4, kind: input, shape index: {}]   ;;  %s367_s5 = inlined_call_operand.vmem [shape: f32[6,2], index: 5, kind: input, shape index: {}]   ;;  %s368_s6 = inlined_call_operand.vmem [shape: f32[6,1], index: 6, kind: input, shape index: {}]   ;;  %s369_s7 = inlined_call_operand.vmem [shape: f32[11,6], index: 7, kind: input, shape index: {}]   ;;  %s370_s8 = inlined_call_operand.vmem [shape: f32[11,1], index: 8, kind: input, shape index: {}]   ;;  %s371_s9 = inlined_call_operand.hbm [shape: f32[13,128], index: 9, kind: output, shape index: {}]  }
   0x1   :  { %v34_v0 = vld [vmem:[%s362_s0 + $0x8] sm:$0x7]  ;;  %v33_v1 = vld [vmem:[%s362_s0] sm:$0xff]  ;;  %231 = vset.pattern.permute.xlu0 %v264_v4  ;;  %232 = vset.pattern.permute.xlu1 %v264_v4 }
   0x2   :  { %218 = vmatpush.msk.msra.mxu0 %vm46_vm0, %v34_v0  ;;  %v35_v2 = vld [vmem:[%s363_s1] sm:$0x3f] }
   0x3   :  { %v36_v3 = vld [vmem:[%s364_s2] sm:$0x3f] }
   0x4   :  { %14 = vsyncpa [#allocation3], 0  ;;  %65 = vmatpush.msra.mxu0 %v33_v1  ;;  %39 = vperm.xlu0 %231, %v36_v3   ;;  %v72_v5 = vld [vmem:[%s366_s4] sm:$0x3]  ;;  %vm82_vm2 = vcmask 1045504   ;;  %vm78_vm3 = vcmask 48128  }
   0x5   :  { %219 = vmatmul.msk.f32.vlgmr.msra.gmra.mxu0 %vm42_vm1, %v35_v2  ;;  %233 = vset.pattern.permute.xlu2 %v264_v4  ;;  %v71_v9 = vld [vmem:[%s365_s3] sm:$0x3]  ;;  %vm120_vm5 = vcmask 1041408   ;;  %vm116_vm6 = vcmask 15360   ;;  %v148_v19 = vld [vmem:[%s370_s8 + $0x8] sm:$0x7] }
   0x6   :  { %v110_v11 = vld [vmem:[%s368_s6] sm:$0x3f]  ;;  %156 = vperm.xlu2 %233, %v148_v19   ;;  %v146_v25 = vld [vmem:[%s369_s7 + $0x8] sm:$0x7]  ;;  %s206_s29 = sshll.u32 %s371_s9, 4  ;;  %s267_s30 = smov 8   ;;  %s207_s29 = int_to_ptr.hbm [resolvable:$true] %s206_s29 }
   0x7   :  { %113 = vperm.xlu1 %232, %v110_v11   ;;  %v147_v12 = vld [vmem:[%s370_s8] sm:$0xff]  ;;  %s265_s8 = smov [#allocation2]  }
   0x8   :  { %v109_v17 = vld [vmem:[%s367_s5] sm:$0x3f]  ;;  %s204_s26 = sshll.u32 %s265_s8, 4  ;;  %s205_s26 = int_to_ptr.vmem [resolvable:$true] %s204_s26 }
   0x9   :  { %v145_v23 = vld [vmem:[%s369_s7] sm:$0xff]  ;;  %s266_s7 = smov 128  }
   0xc   :  { %75 = vperm.xlu0 %231, %v72_v5  }
   0xf   :  { %151 = vperm.xlu1 %232, %v147_v12  }
  0x60   :  { %v157_v31 = vpop.permute.xlu2 %156 }
  0x76   :  { %v40_v6 = vpop.permute.xlu0 %39 }
  0x79   :  { %v114_v20 = vpop.permute.xlu1 %113 }
  0x7e   :  { %v76_v13 = vpop.permute.xlu0 %75 }
  0x81   :  { %v152_v26 = vpop.permute.xlu1 %151 }
  0x82   :  { %v67_v7 = vpop.f32.mrf.mxu0 }
  0x83   :  { %v68_v8 = vadd.f32 %v67_v7, %v40_v6 }
  0x85   :  { %234 = vtanh.f32 %v68_v8 }
  0x8b   :  { %v235_v10 = vpop.eup %234 }
  0x8c   :  { %220 = vmatpush.msk.msra.mxu1 %vm82_vm2, %v235_v10 }
  0x8d   :  { %221 = vmatmul.msk.f32.vlgmr.msra.gmra.mxu1 %vm78_vm3, %v71_v9 }
 0x10a   :  { %v103_v14 = vpop.f32.mrf.mxu1 }
 0x10b   :  { %v104_v15 = vadd.f32 %v103_v14, %v76_v13 }
 0x10d   :  { %vm106_vm4 = vcmp.ge.f32.partialorder %v104_v15, 0.0  ;;  %v107_v16 = vmul.f32 0.01, %v104_v15 }
 0x10f   :  { %v108_v18 = vsel %vm106_vm4, %v104_v15, %v107_v16 }
 0x110   :  { %222 = vmatpush.msk.msra.mxu2 %vm120_vm5, %v108_v18  ;;  %197 = vst [vmem:[#allocation2] sm:$0x3] %v108_v18 }
 0x111   :  { %223 = vmatmul.msk.f32.vlgmr.msra.gmra.mxu2 %vm116_vm6, %v109_v17 }
 0x194   :  { %v141_v21 = vpop.f32.mrf.mxu2 }
 0x195   :  { %v142_v22 = vadd.f32 %v141_v21, %v114_v20 }
 0x197   :  { %236 = vtanh.f32 %v142_v22 }
 0x19d   :  { %v237_v24 = vpop.eup %236 }
 0x19e   :  { %224 = vmatpush.msk.msra.mxu3 %vm82_vm2, %v237_v24 }
 0x19f   :  { %225 = vmatmul.msk.f32.vlgmr.msra.gmra.mxu3 %vm78_vm3, %v145_v23 }
 0x1a7   :  { %226 = vmatmul.msk.f32.gmra.mxu3 %vm78_vm3, %v146_v25 }
 0x222   :  { %v185_v27 = vpop.f32.mrf.mxu3 }
 0x223   :  { %v186_v28 = vadd.f32 %v185_v27, %v152_v26 }
 0x225   :  { %vm191_vm7 = vcmp.ge.f32.partialorder %v186_v28, 0.0  ;;  %v193_v29 = vmul.f32 0.01, %v186_v28 }
 0x227   :  { %v195_v30 = vsel %vm191_vm7, %v186_v28, %v193_v29 }
 0x228   :  { %198 = vst [vmem:[#allocation2 + $0x2] sm:$0xff] %v195_v30 }
 0x22a   :  { %v188_v32 = vpop.f32.mrf.mxu3 }
 0x22b   :  { %v189_v33 = vadd.f32 %v188_v32, %v157_v31 }
 0x22d   :  { %vm192_vm8 = vcmp.ge.f32.partialorder %v189_v33, 0.0  ;;  %v194_v34 = vmul.f32 0.01, %v189_v33 }
 0x22f   :  { %v196_v35 = vsel %vm192_vm8, %v189_v33, %v194_v34 }
 0x230   :  { %199 = vst [vmem:[#allocation2 + $0xa] sm:$0x7] %v196_v35 }
 0x231   :  { %212 = dma.vmem_to_hbm [thread:$0]  %s205_s26, 256, %s207_s29, [#allocation3], %s266_s7, %s266_s7, %s267_s30  }
 0x232   :  { %262 = dma.done.wait [#allocation3], 256  }
 0x233   :  { %263 = vsyncadd [#allocation3], 4294967040 }
 0x234   :  { %217 = vsyncpa [#allocation3], 1 }

</bundles_post_ra>
